<compile_context>
chip_gen: v6e
topology: v6e:2x2x1
jax: 0.10.0
libtpu: 0.0.40
codegen_flags: <defaults>
</compile_context>

<pallas_src>
import functools

import jax
import jax.numpy as jnp
from jax.experimental import pallas as pl
from jax.experimental.pallas import tpu as pltpu


def _cdiv(a, b):
    return -(-a // b)


def _round_up(v, m):
    return _cdiv(v, m) * m


def _make_mse_kernel(*, rows, tile_rows, lanes, inv_n, tiles_per_core,
                     needs_mask):
    """Kernel: accumulate sum((x - y)^2) per core; finalize to partial mean."""

    def kernel(x_ref, y_ref, o_ref, acc_ref):
        c = pl.program_id(0)   # core / parallel axis
        i = pl.program_id(1)   # reduction (row-tile) axis

        @pl.when(i == 0)
        def _():
            acc_ref[...] = jnp.zeros_like(acc_ref)

        d = x_ref[...].astype(jnp.float32) - y_ref[...].astype(jnp.float32)
        sq = d * d

        if needs_mask:
            # Global (unclamped) tile index; rows beyond the true row count
            # (ragged tail or clamped duplicate tiles) contribute zero.
            g = c * tiles_per_core + i
            row_ids = g * tile_rows + jax.lax.broadcasted_iota(
                jnp.int32, (tile_rows, lanes), 0)
            sq = jnp.where(row_ids < rows, sq, 0.0)

        # Pure elementwise accumulate each step (VPU); defer the expensive
        # cross-lane/sublane reduce to the final step.
        acc_ref[...] += sq

        @pl.when(i == tiles_per_core - 1)
        def _():
            o_ref[...] = (jnp.sum(acc_ref[...]) * inv_n).reshape(1, 1, 1)

    return kernel


def mse_loss(x, y, *, lanes=128, target_block_rows=8192, num_cores=2):
    """Equivalent of torch.nn.MSELoss()(x, y): mean((x - y)^2) over all elems."""
    assert x.shape == y.shape, "MSELoss requires matching shapes"
    assert x.dtype == y.dtype, "MSELoss inputs must share a dtype"
    n = x.size
    if n == 0:
        return jnp.float32(jnp.nan)  # matches torch's empty-input behavior

    xf = jnp.ravel(x)
    yf = jnp.ravel(y)

    # Lane pad only when the element count is not a multiple of 128 (pad < 128
    # elements; equal zero padding in both operands adds 0 to the sum).
    rem = n % lanes
    if rem:
        pad = lanes - rem
        xf = jnp.pad(xf, (0, pad))
        yf = jnp.pad(yf, (0, pad))
    rows = xf.size // lanes
    x2d = xf.reshape(rows, lanes)
    y2d = yf.reshape(rows, lanes)

    # Sublane multiple: 8 for 4-byte, 16 for 2-byte, 32 for 1-byte dtypes.
    itemsize = jnp.dtype(x.dtype).itemsize
    sub = max(8, 32 // max(1, itemsize))
    tile_rows = min(_round_up(target_block_rows, sub), _round_up(rows, sub))

    num_tiles = _cdiv(rows, tile_rows)
    num_cores = max(1, min(num_cores, num_tiles))
    tiles_per_core = _cdiv(num_tiles, num_cores)
    needs_mask = num_cores * tiles_per_core * tile_rows > rows
    inv_n = 1.0 / float(n)

    kernel = _make_mse_kernel(
        rows=rows, tile_rows=tile_rows, lanes=lanes, inv_n=inv_n,
        tiles_per_core=tiles_per_core, needs_mask=needs_mask)

    if num_cores * tiles_per_core == num_tiles:
        def in_map(c, i):
            return (c * tiles_per_core + i, 0)
    else:
        last_tile = num_tiles - 1

        def in_map(c, i):
            # Clamp so the DMA never targets a fully out-of-bounds block; the
            # in-kernel row mask zeroes the duplicated tile's contribution.
            return (jnp.minimum(c * tiles_per_core + i, last_tile), 0)

    partials = pl.pallas_call(
        kernel,
        out_shape=jax.ShapeDtypeStruct((num_cores, 1, 1), jnp.float32),
        grid_spec=pltpu.PrefetchScalarGridSpec(
            num_scalar_prefetch=0,
            grid=(num_cores, tiles_per_core),
            in_specs=[
                pl.BlockSpec((tile_rows, lanes), in_map),
                pl.BlockSpec((tile_rows, lanes), in_map),
            ],
            out_specs=pl.BlockSpec((1, 1, 1), lambda c, i: (c, 0, 0)),
            scratch_shapes=[pltpu.VMEM((tile_rows, lanes), jnp.float32)],
        ),
        compiler_params=pltpu.CompilerParams(
            dimension_semantics=("parallel", "arbitrary"),
            vmem_limit_bytes=48 << 20,
        ),
    )(x2d, y2d)

    # Each per-core partial already includes the 1/N factor; summing the
    # (<=2)-element partial vector yields the mean.
    return jnp.sum(partials)


if __name__ == "__main__":
    key = jax.random.PRNGKey(0)
    k1, k2, k3, k4 = jax.random.split(key, 4)

    # Primary: NCHW conv-style activation (2, 4, 16, 16), f32, default tiling.
    x = jax.random.normal(k1, (2, 4, 16, 16), dtype=jnp.float32)
    t = jax.random.normal(k2, (2, 4, 16, 16), dtype=jnp.float32)
    loss = mse_loss(x, t)
    jax.block_until_ready(loss)
    ref = jnp.mean((x - t) ** 2)
    assert jnp.allclose(loss, ref, rtol=1e-5, atol=1e-6), (loss, ref)

    # Sanity: small tile override exercises the multi-tile 2-core split with a
    # clamped, fully-masked trailing tile (odd tile count).
    x2 = jax.random.normal(k3, (3, 4, 16, 16), dtype=jnp.float32)
    t2 = jax.random.normal(k4, (3, 4, 16, 16), dtype=jnp.float32)
    loss2 = mse_loss(x2, t2, target_block_rows=8)
    jax.block_until_ready(loss2)
    ref2 = jnp.mean((x2 - t2) ** 2)
    assert jnp.allclose(loss2, ref2, rtol=1e-5, atol=1e-6), (loss2, ref2)

    # Sanity: bf16 inputs stream without a wrapper cast (upcast in-kernel).
    xb = x.astype(jnp.bfloat16)
    tb = t.astype(jnp.bfloat16)
    loss3 = mse_loss(xb, tb)
    jax.block_until_ready(loss3)
    ref3 = jnp.mean((xb.astype(jnp.float32) - tb.astype(jnp.float32)) ** 2)
    assert jnp.allclose(loss3, ref3, rtol=1e-5, atol=1e-6), (loss3, ref3)

    print("KERNEL_OK")
</pallas_src>

<mosaic_0001>
module attributes {stable_mosaic.version = 11 : i64} {
  func.func @kernel(%arg0: i32, %arg1: i32, %arg2: memref<16x128xf32, #tpu.memory_space<vmem>>, %arg3: memref<16x128xf32, #tpu.memory_space<vmem>>, %arg4: memref<1x1x1xf32, #tpu.memory_space<vmem>>, %arg5: memref<16x128xf32, #tpu.memory_space<vmem>>) attributes {dimension_semantics = [#tpu.dimension_semantics<parallel>, #tpu.dimension_semantics<arbitrary>], iteration_bounds = array<i64: 1, 1>, scalar_prefetch = 0 : i64, scratch_operands = 1 : i64, tpu.core_type = #tpu.core_type<tc>, window_params = [{transform_indices = @transform_0, window_bounds = array<i64: 16, 128>}, {transform_indices = @transform_1, window_bounds = array<i64: 16, 128>}, {transform_indices = @transform_2, window_bounds = array<i64: 1, 1, 1>}]} {
    %c0_i32 = arith.constant 0 : i32
    %0 = arith.cmpi eq, %arg1, %c0_i32 : i32
    %1 = arith.extui %0 : i1 to i32
    %c0_i32_0 = arith.constant 0 : i32
    %2 = arith.cmpi ne, %1, %c0_i32_0 : i32
    scf.if %2 {
      %cst = arith.constant 0.000000e+00 : f32
      %13 = vector.broadcast %cst : f32 to vector<16x128xf32>
      %c0_10 = arith.constant 0 : index
      %c0_11 = arith.constant 0 : index
      %14 = vector.load %arg5[%c0_10, %c0_11] : memref<16x128xf32, #tpu.memory_space<vmem>>, vector<16x128xf32>
      tpu.vector_store %arg5[%c0_10, %c0_11], %13 {strides = array<i32>} : memref<16x128xf32, #tpu.memory_space<vmem>>, vector<16x128xf32>,
    } else {
    }
    %c0 = arith.constant 0 : index
    %c0_1 = arith.constant 0 : index
    %3 = vector.load %arg2[%c0, %c0_1] : memref<16x128xf32, #tpu.memory_space<vmem>>, vector<16x128xf32>
    %c0_2 = arith.constant 0 : index
    %c0_3 = arith.constant 0 : index
    %4 = vector.load %arg3[%c0_2, %c0_3] : memref<16x128xf32, #tpu.memory_space<vmem>>, vector<16x128xf32>
    %5 = arith.subf %3, %4 : vector<16x128xf32>
    %6 = arith.mulf %5, %5 : vector<16x128xf32>
    %c0_4 = arith.constant 0 : index
    %c0_5 = arith.constant 0 : index
    %7 = vector.load %arg5[%c0_4, %c0_5] : memref<16x128xf32, #tpu.memory_space<vmem>>, vector<16x128xf32>
    %8 = arith.addf %7, %6 : vector<16x128xf32>
    %c0_6 = arith.constant 0 : index
    %c0_7 = arith.constant 0 : index
    %9 = vector.load %arg5[%c0_6, %c0_7] : memref<16x128xf32, #tpu.memory_space<vmem>>, vector<16x128xf32>
    tpu.vector_store %arg5[%c0_6, %c0_7], %8 {strides = array<i32>} : memref<16x128xf32, #tpu.memory_space<vmem>>, vector<16x128xf32>,
    %c0_i32_8 = arith.constant 0 : i32
    %10 = arith.cmpi eq, %arg1, %c0_i32_8 : i32
    %11 = arith.extui %10 : i1 to i32
    %c0_i32_9 = arith.constant 0 : i32
    %12 = arith.cmpi ne, %11, %c0_i32_9 : i32
    scf.if %12 {
      %c0_10 = arith.constant 0 : index
      %c0_11 = arith.constant 0 : index
      %13 = vector.load %arg5[%c0_10, %c0_11] : memref<16x128xf32, #tpu.memory_space<vmem>>, vector<16x128xf32>
      %14 = vector.shape_cast %13 : vector<16x128xf32> to vector<1x16x128xf32>
      %cst = arith.constant dense<0.000000e+00> : vector<1xf32>
      %15 = vector.multi_reduction <add>, %14, %cst [1, 2] : vector<1x16x128xf32> to vector<1xf32>
      %16 = vector.shape_cast %15 : vector<1xf32> to vector<1x1x1xf32>
      %17 = vector.extract %16[0, 0, 0] : f32 from vector<1x1x1xf32>
      %cst_12 = arith.constant 4.8828125E-4 : f32
      %18 = arith.mulf %17, %cst_12 : f32
      %19 = vector.broadcast %18 : f32 to vector<1x1x1xf32>
      %c0_13 = arith.constant 0 : index
      %c0_14 = arith.constant 0 : index
      %c0_15 = arith.constant 0 : index
      %20 = vector.load %arg4[%c0_13, %c0_14, %c0_15] : memref<1x1x1xf32, #tpu.memory_space<vmem>>, vector<1x1x1xf32>
      tpu.vector_store %arg4[%c0_13, %c0_14, %c0_15], %19 {strides = array<i32>} : memref<1x1x1xf32, #tpu.memory_space<vmem>>, vector<1x1x1xf32>,
    } else {
    }
    return
  }
  func.func @transform_0(%arg0: i32, %arg1: i32) -> (i32, i32) {
    %c1_i32 = arith.constant 1 : i32
    %0 = arith.muli %arg0, %c1_i32 : i32
    %1 = arith.addi %0, %arg1 : i32
    %c0_i32 = arith.constant 0 : i32
    %c0_i32_0 = arith.constant 0 : i32
    return %1, %c0_i32 : i32, i32
  }
  func.func @transform_1(%arg0: i32, %arg1: i32) -> (i32, i32) {
    %c1_i32 = arith.constant 1 : i32
    %0 = arith.muli %arg0, %c1_i32 : i32
    %1 = arith.addi %0, %arg1 : i32
    %c0_i32 = arith.constant 0 : i32
    %c0_i32_0 = arith.constant 0 : i32
    return %1, %c0_i32 : i32, i32
  }
  func.func @transform_2(%arg0: i32, %arg1: i32) -> (i32, i32, i32) {
    %c0_i32 = arith.constant 0 : i32
    %c0_i32_0 = arith.constant 0 : i32
    %c0_i32_1 = arith.constant 0 : i32
    return %arg0, %c0_i32, %c0_i32_0 : i32, i32, i32
  }
}

</mosaic_0001>

<bundles_post_ra>
// kernel: tpu_custom_call.1
= control target key start
LH: loop header
LB: loop body
LE: loop exit
PB: predicated region body
PF: predicated region fallthrough
CT: control target
= control target key end

     0   :  { %7 = vsyncpa [#allocation4], 0  ;;  %s209_s0 = inlined_call_operand.hbm [shape: f32[16,128], index: 0, kind: input, shape index: {}]   ;;  %s210_s1 = inlined_call_operand.hbm [shape: f32[16,128], index: 1, kind: input, shape index: {}]   ;;  %s211_s2 = inlined_call_operand.hbm [shape: f32[1,1,1], index: 2, kind: output, shape index: {}]  }
   0x1   :  { %8 = vsyncpa [#allocation7], 0 }
   0x2   :  { %9 = vsyncpa [#allocation5], 0  ;;  %s180_s9 = smov [#allocation3]  }
   0x3   :  { %s19_s10 = sshll.u32 %s180_s9, 4  ;;  %s20_s10 = int_to_ptr.vmem [resolvable:$true] %s19_s10 }
   0x4   :  { %s122_s11 = scalar_lea.vmem %s20_s10, 256  ;;  %p127_p1 = scmp.lt.s32.totalorder %s20_s10, %s20_s10 }
   0x5   :  { %p123_p0 = scmp.ne.s32.totalorder %s20_s10, %s122_s11  ;;  %p128_p2 = scmp.lt.s32.totalorder %s122_s11, %s122_s11 }
   0x7   :  { %p129_p3 = por %p128_p2, %p127_p1 }
   0x9   :  { %p130_p4 = pnand %p129_p3, %p123_p0 }
   0xb   :  { %133 = shalt.err (!%p130_p4)
}
   0xc   :  { %s181_s12 = smov 128   ;;  %s182_s13 = smov 8  }
   0xd   :  { %25 = dma.hbm_to_vmem [thread:$0]  %s209_s0, 256, %s20_s10, [#allocation4], %s181_s12, %s181_s12, %s182_s13  }
   0xe   :  { %s183_s16 = smov [#allocation6]  }
   0xf   :  { %s35_s17 = sshll.u32 %s183_s16, 4  ;;  %s36_s17 = int_to_ptr.vmem [resolvable:$true] %s35_s17 }
  0x10   :  { %s142_s18 = scalar_lea.vmem %s36_s17, 256  ;;  %p147_p6 = scmp.lt.s32.totalorder %s36_s17, %s36_s17 }
  0x11   :  { %p143_p5 = scmp.ne.s32.totalorder %s36_s17, %s142_s18  ;;  %p148_p7 = scmp.lt.s32.totalorder %s142_s18, %s142_s18 }
  0x13   :  { %p149_p8 = por %p148_p7, %p147_p6 }
  0x15   :  { %p150_p9 = pnand %p149_p8, %p143_p5 }
  0x17   :  { %153 = shalt.err (!%p150_p9)
}
  0x18   :  { %41 = dma.hbm_to_vmem [thread:$0]  %s210_s1, 256, %s36_s17, [#allocation7], %s181_s12, %s181_s12, %s182_s13  }
  0x19   :  { %174 = dma.done.wait [#allocation4], 256  }
  0x1a   :  { %175 = vsyncadd [#allocation4], 4294967040 }
  0x1b   :  { %176 = dma.done.wait [#allocation7], 256  }
  0x1c   :  { %177 = vsyncadd [#allocation7], 4294967040  ;;  %v58_v0 = vld [vmem:[#allocation3] sm:$0xff]  ;;  %v59_v1 = vld [vmem:[#allocation3 + $0x8] sm:$0xff]  ;;  %s184_s0 = smov [#allocation8]   ;;  %vm89_vm0 = vcmask 0  }
  0x1d   :  { %v60_v2 = vld [vmem:[#allocation6] sm:$0xff]  ;;  %v61_v3 = vld [vmem:[#allocation6 + $0x8] sm:$0xff]  ;;  %s97_s1 = sshll.u32 %s184_s0, 4  ;;  %s98_s1 = int_to_ptr.vmem [resolvable:$true] %s97_s1 }
  0x1e   :  { %v62_v4 = vsub.f32 %v58_v0, %v60_v2  ;;  %v63_v5 = vsub.f32 %v59_v1, %v61_v3  ;;  %s154_s23 = scalar_lea.vmem %s98_s1, 16  ;;  %s158_s24 = scalar_lea.vmem %s98_s1, 32 }
  0x1f   :  { %p155_p10 = scmp.ne.s32.totalorder %s98_s1, %s154_s23  ;;  %p159_p11 = scmp.lt.s32.totalorder %s98_s1, %s98_s1 }
  0x20   :  { %v64_v6 = vmul.f32 %v62_v4, %v62_v4  ;;  %v65_v7 = vmul.f32 %v63_v5, %v63_v5  ;;  %p160_p12 = scmp.lt.s32.totalorder %s158_s24, %s154_s23 }
  0x22   :  { %v77_v8 = vadd.f32 %v65_v7, %v64_v6  ;;  %p161_p13 = por %p160_p12, %p159_p11 }
  0x24   :  { %78 = vadd.xlane.f32.xlu0 %v77_v8  ;;  %p162_p0 = pnand %p161_p13, %p155_p10 }
  0xad   :  { %v79_v9 = vpop.xlane.xlu0 %78 }
  0xae   :  { %v80_v10 = vrot.slane %v79_v9, 4 }
  0xb0   :  { %v81_v11 = vadd.f32 %v80_v10, %v79_v9 }
  0xb2   :  { %v82_v12 = vrot.slane %v81_v11, 2 }
  0xb4   :  { %v83_v13 = vadd.f32 %v82_v12, %v81_v11 }
  0xb6   :  { %v84_v14 = vrot.slane %v83_v13, 1 }
  0xb8   :  { %v85_v15 = vadd.f32 %v84_v14, %v83_v13 }
  0xba   :  { %107 = vpush %v85_v15 }
  0xeb   :  { %s108_s21 = spop %107 }
  0xec   :  { %s87_s22 = smul.f32 0.00048828125, %s108_s21 }
  0xee   :  { %v88_v16 = vstv %s87_s22 }
  0xef   :  { %90 = vst.msk [vmem:[#allocation8] sm:$0x1] %vm89_vm0, %v88_v16 }
  0xf0   :  { %165 = shalt.err (!%p162_p0)
}
  0xf1   :  { %100 = dma.vmem_to_hbm [thread:$0]  %s98_s1, 16, %s211_s2, [#allocation5]  }
  0xf2   :  { %178 = dma.done.wait [#allocation5], 16  }
  0xf3   :  { %179 = vsyncadd [#allocation5], 4294967280 }
  0xf4   :  { %104 = vsyncpa [#allocation4], 1 }
  0xf5   :  { %105 = vsyncpa [#allocation7], 1 }
  0xf6   :  { %106 = vsyncpa [#allocation5], 1 }

</bundles_post_ra>
